<compile_context>
chip_gen: v7x
topology: tpu7x:2x2x1
jax: 0.10.0
libtpu: 0.0.40
codegen_flags: <defaults>
</compile_context>

<pallas_src>
import jax
import jax.numpy as jnp
from jax import lax
from jax.experimental import pallas as pl
from jax.experimental.pallas import tpu as pltpu


def _round_up(x, m):
    return ((x + m - 1) // m) * m


def _cdiv(a, b):
    return -(-a // b)


def _tpu_generation():
    """Best-effort chip-family detection; any failure falls back to a safe default."""
    try:
        kind = jax.devices()[0].device_kind.lower()
    except Exception:
        return "unknown"
    if "v7" in kind:
        return "v7x"
    if "v5e" in kind or "v5 lite" in kind or "v5litepod" in kind:
        return "v5e"
    if "v6" in kind:
        return "v6e"
    return "unknown"


def _choose_tile(m, n_cores, tm_max):
    """Minimal-step tiling: big lane-dense tiles, even step count on 2-TC chips."""
    n_steps = max(n_cores, _cdiv(m, tm_max))
    if n_cores >= 2 and m >= 256:
        n_steps = _round_up(n_steps, 2)          # keep both v7x TensorCores busy
    tm = min(_round_up(m, 128), _round_up(_cdiv(m, n_steps), 128), tm_max)
    grid = _cdiv(m, tm)
    return tm, grid, grid * tm


def _make_kernel(cmid, conv_splits):
    def kernel(sp_ref, w1_ref, b1_ref, w2_ref, b2_ref, o_ref):
        # sp_ref : (80, TM)  bf16  transposed 4x4xCin superpatch per 2x2 maxpool window
        # w1_ref : (256, 80) bf16  conv3x3 weights replicated at the 4 sub-positions
        # b1_ref : (64, 1)   f32   conv bias
        # w2_ref : (12, 64)  bf16  transposed ConvTranspose2d weights, rows = (kh, kw, rgb)
        # b2_ref : (12, 1)   f32   deconv bias tiled over the 4 sub-pixels
        # o_ref  : (12, TM)  bf16  lane-dense transposed output
        sp = sp_ref[...]
        w1 = w1_ref[...]
        chunk = w1.shape[0] // conv_splits
        per = 4 // conv_splits
        # MaxPool2d(2,2) == max over the 4 conv sub-positions of each pooling window;
        # bias + ReLU are hoisted past the max (both monotone).
        z = None
        for s in range(conv_splits):
            zs = jnp.dot(w1[s * chunk:(s + 1) * chunk], sp,
                         preferred_element_type=jnp.float32)        # (chunk, TM)
            for p in range(per):
                zp = zs[p * cmid:(p + 1) * cmid]                    # (cmid, TM)
                z = zp if z is None else jnp.maximum(z, zp)
        enc = jnp.maximum(z + b1_ref[...], 0.0)                     # (cmid, TM)
        # ConvTranspose2d(64->3, k=2, s=2) is non-overlapping -> one matmul to 12 rows.
        y = jnp.dot(w2_ref[...], enc.astype(jnp.bfloat16),
                    preferred_element_type=jnp.float32) + b2_ref[...]  # (12, TM)
        o_ref[...] = pl.reciprocal(1.0 + jnp.exp(-y), approx=True).astype(o_ref.dtype)
    return kernel


def xtorgb_forward(x_nchw, condition, w_conv, b_conv, w_dec, b_dec):
    # `condition` is ignored by the PyTorch forward; kept only for signature parity.
    del condition
    N, Cin, H, W = x_nchw.shape
    Hp, Wp = H // 2, W // 2
    Cmid = w_conv.shape[0]          # 64
    Cout = w_dec.shape[1]           # 3
    K = 16 * Cin                    # 80 superpatch features per pooled pixel
    R = 4 * Cout                    # 12 output rows: (kh, kw) deconv sub-pixel x RGB
    M = N * Hp * Wp

    # ---- generation-aware configuration --------------------------------------------
    gen = _tpu_generation()
    n_cores = 2 if gen == "v7x" else 1            # v7x: 2 TensorCores/chip
    conv_splits = 2 if gen == "v5e" else 1        # v5e: avoid full (256,tm) f32 round-trip
    tm_max = 4096 if gen == "v5e" else 8192       # v5e scoped-VMEM default is 16 MiB
    tm, grid_m, M_pad = _choose_tile(M, n_cores, tm_max)

    # ---- glue: bf16 4x4 superpatch per pooling window, transposed (features x pixels) ----
    xb = x_nchw.astype(jnp.bfloat16)                               # cast BEFORE pad/slices
    xp = jnp.pad(xb, ((0, 0), (0, 0), (1, 1), (1, 1)))             # (N,Cin,H+2,W+2)
    taps = [xp[:, :, dy:dy + 2 * Hp:2, dx:dx + 2 * Wp:2]
            for dy in range(4) for dx in range(4)]                 # each (N,Cin,Hp,Wp)
    sp = jnp.stack(taps, axis=0).reshape(4, 4, N, Cin, Hp, Wp)     # (dy,dx,n,c,i,j)
    spT = jnp.transpose(sp, (0, 1, 3, 2, 4, 5)).reshape(K, M)      # (dy,dx,c) x (n,i,j)
    if M_pad != M:
        spT = jnp.pad(spT, ((0, 0), (0, M_pad - M)))

    # ---- glue: weights into transposed matmul form (bf16); biases stay fp32 ----------
    wk = jnp.transpose(w_conv, (0, 2, 3, 1))                       # (Cmid,kh,kw,Cin)
    w4 = jnp.zeros((2, 2, Cmid, 4, 4, Cin), w_conv.dtype)
    for a in range(2):
        for b in range(2):
            w4 = w4.at[a, b, :, a:a + 3, b:b + 3, :].set(wk)       # 3x3 window in 4x4 patch
    w1s = w4.reshape(4 * Cmid, K).astype(jnp.bfloat16)             # (256, 80)
    b1 = b_conv.reshape(Cmid, 1).astype(jnp.float32)
    w2T = jnp.transpose(w_dec, (2, 3, 1, 0)).reshape(R, Cmid).astype(jnp.bfloat16)  # (12,64)
    b2 = jnp.tile(b_dec, 4).reshape(R, 1).astype(jnp.float32)

    cost = pl.CostEstimate(
        flops=2 * M_pad * (4 * Cmid * K + Cmid * R),
        transcendentals=2 * M_pad * R,                             # exp + approx recip (EUP)
        bytes_accessed=spT.size * 2 + M_pad * R * 2 + (w1s.size + w2T.size) * 2,
    )

    out_T = pl.pallas_call(
        _make_kernel(Cmid, conv_splits),
        out_shape=jax.ShapeDtypeStruct((R, M_pad), jnp.bfloat16),  # bf16 writeback
        grid_spec=pltpu.PrefetchScalarGridSpec(
            num_scalar_prefetch=0,
            grid=(grid_m,),
            in_specs=[
                pl.BlockSpec((K, tm), lambda i: (0, i)),           # superpatches (lane-dense)
                pl.BlockSpec((4 * Cmid, K), lambda i: (0, 0)),     # conv weights (resident)
                pl.BlockSpec((Cmid, 1), lambda i: (0, 0)),
                pl.BlockSpec((R, Cmid), lambda i: (0, 0)),         # deconv weights (resident)
                pl.BlockSpec((R, 1), lambda i: (0, 0)),
            ],
            out_specs=pl.BlockSpec((R, tm), lambda i: (0, i)),     # lane-dense output
        ),
        compiler_params=pltpu.CompilerParams(dimension_semantics=("parallel",)),
        cost_estimate=cost,
    )(spT, w1s, b1, w2T, b2)

    # ---- glue: (12, M) -> (N, 3, H, W) pixel shuffle (stays in bf16) -----------------
    out = out_T[:, :M].reshape(2, 2, Cout, N, Hp, Wp)              # (kh,kw,o,n,i,j)
    out = jnp.transpose(out, (3, 2, 4, 0, 5, 1)).reshape(N, Cout, H, W)
    return out                                                     # bf16


def ref_forward(x_nchw, w_conv, b_conv, w_dec, b_dec):
    # Pure-JAX fp32 reference mirroring the PyTorch module exactly.
    y = lax.conv_general_dilated(x_nchw, w_conv, (1, 1), ((1, 1), (1, 1)),
                                 dimension_numbers=("NCHW", "OIHW", "NCHW"))
    y = jnp.maximum(y + b_conv[None, :, None, None], 0.0)
    y = lax.reduce_window(y, -jnp.inf, lax.max, (1, 1, 2, 2), (1, 1, 2, 2), "VALID")
    # Non-overlapping ConvTranspose2d(k=2,s=2,p=0): scatter weight[c,o,a,b] at (2i+a, 2j+b).
    z = jnp.einsum("ncij,coab->noiajb", y, w_dec)
    N, Co, Hp, _, Wp, _ = z.shape
    z = z.reshape(N, Co, 2 * Hp, 2 * Wp) + b_dec[None, :, None, None]
    return 1.0 / (1.0 + jnp.exp(-z))


if __name__ == "__main__":
    key = jax.random.PRNGKey(0)
    k1, k2, k3, k4, kx, kc = jax.random.split(key, 6)

    N, Cin, H, W = 2, 5, 16, 16
    x = jax.random.normal(kx, (N, Cin, H, W), jnp.float32)
    condition = jax.random.normal(kc, (N, 8), jnp.float32)   # unused by the forward

    # Deterministic synthetic parameters (shapes from the module __init__).
    w_conv = jax.random.normal(k1, (64, Cin, 3, 3), jnp.float32) * 0.1   # Conv2d (O,I,kh,kw)
    b_conv = jax.random.normal(k2, (64,), jnp.float32) * 0.1
    w_dec = jax.random.normal(k3, (64, 3, 2, 2), jnp.float32) * 0.1      # ConvT (I,O,kh,kw)
    b_dec = jax.random.normal(k4, (3,), jnp.float32) * 0.1

    out = jax.block_until_ready(
        jax.jit(xtorgb_forward)(x, condition, w_conv, b_conv, w_dec, b_dec))
    ref = jax.block_until_ready(ref_forward(x, w_conv, b_conv, w_dec, b_dec))

    assert out.shape == (N, 3, H, W), out.shape
    err = float(jnp.max(jnp.abs(out.astype(jnp.float32) - ref)))
    # bf16 inputs/weights/output + approx reciprocal, fp32 accumulation -> loosened tol.
    assert err < 2e-2, err
    print("KERNEL_OK")
</pallas_src>

<mosaic_0001>
module attributes {stable_mosaic.version = 11 : i64} {
  func.func @kernel(%arg0: i32, %arg1: memref<80x128xbf16, #tpu.memory_space<vmem>>, %arg2: memref<256x80xbf16, #tpu.memory_space<vmem>>, %arg3: memref<64x1xf32, #tpu.memory_space<vmem>>, %arg4: memref<12x64xbf16, #tpu.memory_space<vmem>>, %arg5: memref<12x1xf32, #tpu.memory_space<vmem>>, %arg6: memref<12x128xbf16, #tpu.memory_space<vmem>>) attributes {dimension_semantics = [#tpu.dimension_semantics<parallel>], iteration_bounds = array<i64: 1>, scalar_prefetch = 0 : i64, scratch_operands = 0 : i64, tpu.core_type = #tpu.core_type<tc>, window_params = [{transform_indices = @transform_0, window_bounds = array<i64: 80, 128>}, {pipeline_mode = #tpu.pipeline_mode<synchronous>, transform_indices = @transform_1, window_bounds = array<i64: 256, 80>}, {pipeline_mode = #tpu.pipeline_mode<synchronous>, transform_indices = @transform_2, window_bounds = array<i64: 64, 1>}, {pipeline_mode = #tpu.pipeline_mode<synchronous>, transform_indices = @transform_3, window_bounds = array<i64: 12, 64>}, {pipeline_mode = #tpu.pipeline_mode<synchronous>, transform_indices = @transform_4, window_bounds = array<i64: 12, 1>}, {transform_indices = @transform_5, window_bounds = array<i64: 12, 128>}]} {
    %c0 = arith.constant 0 : index
    %c0_0 = arith.constant 0 : index
    %0 = vector.load %arg1[%c0, %c0_0] : memref<80x128xbf16, #tpu.memory_space<vmem>>, vector<80x128xbf16>
    %c0_1 = arith.constant 0 : index
    %c0_2 = arith.constant 0 : index
    %1 = vector.load %arg2[%c0_1, %c0_2] : memref<256x80xbf16, #tpu.memory_space<vmem>>, vector<256x80xbf16>
    %cst = arith.constant dense<0.000000e+00> : vector<256x128xf32>
    %2 = tpu.matmul %1, %0, %cst {dimension_numbers = #tpu.dot_dimension_numbers<[1], [0], [0], [1], [0, 0, 1, 1], [], []>} : vector<256x80xbf16>, vector<80x128xbf16>, vector<256x128xf32> -> vector<256x128xf32>
    %3 = vector.extract_strided_slice %2 {offsets = [0, 0], sizes = [64, 128], strides = [1, 1]} : vector<256x128xf32> to vector<64x128xf32>
    %4 = vector.extract_strided_slice %2 {offsets = [64, 0], sizes = [64, 128], strides = [1, 1]} : vector<256x128xf32> to vector<64x128xf32>
    %5 = arith.maximumf %3, %4 : vector<64x128xf32>
    %6 = vector.extract_strided_slice %2 {offsets = [128, 0], sizes = [64, 128], strides = [1, 1]} : vector<256x128xf32> to vector<64x128xf32>
    %7 = arith.maximumf %5, %6 : vector<64x128xf32>
    %8 = vector.extract_strided_slice %2 {offsets = [192, 0], sizes = [64, 128], strides = [1, 1]} : vector<256x128xf32> to vector<64x128xf32>
    %9 = arith.maximumf %7, %8 : vector<64x128xf32>
    %c0_3 = arith.constant 0 : index
    %c0_4 = arith.constant 0 : index
    %10 = vector.load %arg3[%c0_3, %c0_4] : memref<64x1xf32, #tpu.memory_space<vmem>>, vector<64x1xf32>
    %11 = vector.broadcast %10 : vector<64x1xf32> to vector<64x128xf32>
    %12 = arith.addf %9, %11 : vector<64x128xf32>
    %cst_5 = arith.constant 0.000000e+00 : f32
    %13 = vector.broadcast %cst_5 : f32 to vector<64x128xf32>
    %14 = arith.maximumf %12, %13 : vector<64x128xf32>
    %c0_6 = arith.constant 0 : index
    %c0_7 = arith.constant 0 : index
    %15 = vector.load %arg4[%c0_6, %c0_7] : memref<12x64xbf16, #tpu.memory_space<vmem>>, vector<12x64xbf16>
    %16 = arith.truncf %14 : vector<64x128xf32> to vector<64x128xbf16>
    %cst_8 = arith.constant dense<0.000000e+00> : vector<12x128xf32>
    %17 = tpu.matmul %15, %16, %cst_8 {dimension_numbers = #tpu.dot_dimension_numbers<[1], [0], [0], [1], [0, 0, 1, 1], [], []>} : vector<12x64xbf16>, vector<64x128xbf16>, vector<12x128xf32> -> vector<12x128xf32>
    %c0_9 = arith.constant 0 : index
    %c0_10 = arith.constant 0 : index
    %18 = vector.load %arg5[%c0_9, %c0_10] : memref<12x1xf32, #tpu.memory_space<vmem>>, vector<12x1xf32>
    %19 = vector.broadcast %18 : vector<12x1xf32> to vector<12x128xf32>
    %20 = arith.addf %17, %19 : vector<12x128xf32>
    %cst_11 = arith.constant 0.000000e+00 : f32
    %21 = vector.broadcast %cst_11 : f32 to vector<12x128xf32>
    %22 = arith.subf %21, %20 : vector<12x128xf32>
    %23 = math.exp %22 : vector<12x128xf32>
    %cst_12 = arith.constant 1.000000e+00 : f32
    %24 = vector.broadcast %cst_12 : f32 to vector<12x128xf32>
    %25 = arith.addf %24, %23 : vector<12x128xf32>
    %26 = tpu.reciprocal %25 {approx = true} : vector<12x128xf32> -> vector<12x128xf32>
    %27 = arith.truncf %26 : vector<12x128xf32> to vector<12x128xbf16>
    %c0_13 = arith.constant 0 : index
    %c0_14 = arith.constant 0 : index
    %28 = vector.load %arg6[%c0_13, %c0_14] : memref<12x128xbf16, #tpu.memory_space<vmem>>, vector<12x128xbf16>
    tpu.vector_store %arg6[%c0_13, %c0_14], %27 {strides = array<i32>} : memref<12x128xbf16, #tpu.memory_space<vmem>>, vector<12x128xbf16>,
    return
  }
  func.func @transform_0(%arg0: i32) -> (i32, i32) {
    %c0_i32 = arith.constant 0 : i32
    %c0_i32_0 = arith.constant 0 : i32
    return %c0_i32, %arg0 : i32, i32
  }
  func.func @transform_1(%arg0: i32) -> (i32, i32) {
    %c0_i32 = arith.constant 0 : i32
    %c0_i32_0 = arith.constant 0 : i32
    %c0_i32_1 = arith.constant 0 : i32
    return %c0_i32, %c0_i32_0 : i32, i32
  }
  func.func @transform_2(%arg0: i32) -> (i32, i32) {
    %c0_i32 = arith.constant 0 : i32
    %c0_i32_0 = arith.constant 0 : i32
    %c0_i32_1 = arith.constant 0 : i32
    return %c0_i32, %c0_i32_0 : i32, i32
  }
  func.func @transform_3(%arg0: i32) -> (i32, i32) {
    %c0_i32 = arith.constant 0 : i32
    %c0_i32_0 = arith.constant 0 : i32
    %c0_i32_1 = arith.constant 0 : i32
    return %c0_i32, %c0_i32_0 : i32, i32
  }
  func.func @transform_4(%arg0: i32) -> (i32, i32) {
    %c0_i32 = arith.constant 0 : i32
    %c0_i32_0 = arith.constant 0 : i32
    %c0_i32_1 = arith.constant 0 : i32
    return %c0_i32, %c0_i32_0 : i32, i32
  }
  func.func @transform_5(%arg0: i32) -> (i32, i32) {
    %c0_i32 = arith.constant 0 : i32
    %c0_i32_0 = arith.constant 0 : i32
    return %c0_i32, %arg0 : i32, i32
  }
}

</mosaic_0001>

<bundles_post_ra>
// kernel: tile.8
= control target key start
LH: loop header
LB: loop body
LE: loop exit
PB: predicated region body
PF: predicated region fallthrough
CT: control target
= control target key end

     0   :  { %s22_s0 = inlined_call_operand.vmem [shape: f32[3], index: 0, kind: input, shape index: {}]   ;;  %s23_s1 = inlined_call_operand.vmem [shape: f32[4,3], index: 1, kind: output, shape index: {}]  }
   0x1   :  { %v4_v0 = vld [vmem:[%s22_s0] ss:$0 sm:$0xff] }
   0x2   :  { %5 = vst [vmem:[%s23_s1] sm:$0xf] %v4_v0 }

// kernel: tile.0
= control target key start
LH: loop header
LB: loop body
LE: loop exit
PB: predicated region body
PF: predicated region fallthrough
CT: control target
= control target key end

     0   :  { %vm7_vm0 = vcmask 7168   ;;  %s26_s10 = smov 126   ;;  %s49_s0 = inlined_call_operand.vmem [shape: f32[4,3], index: 0, kind: input, shape index: {}]   ;;  %s50_s1 = inlined_call_operand.vmem [shape: f32[12,1], index: 1, kind: output, shape index: {}]  }
   0x1   :  { %v4_v0 = vld [vmem:[%s49_s0] sm:$0xf]  ;;  %s25_s0 = smov 127  }
   0x2   :  { %5 = vst [vmem:[#allocation0] sm:$0xf] %v4_v0 }
   0x9   :  { %v9_v1 = vld [vmem:[#allocation0] sm:$0xf]  }
   0xa   :  { %v6_v2 = vld [vmem:[#allocation0] sm:$0xf]   ;;  %10 = vrot.lane.b32.xlu0 %v9_v1, %s25_s0 }
   0xb   :  { %8 = vst.msk [vmem:[%s50_s1] ss:$3 sm:$0xf] %vm7_vm0, %v6_v2   ;;  %v15_v3 = vld [vmem:[#allocation0] sm:$0xf]  }
   0xe   :  { %16 = vrot.lane.b32.xlu0 %v15_v3, %s26_s10 }
  0x7c   :  { %v11_v4 = vpop.permute.xlu0 %10  }
  0x7d   :  { %21 = vst.msk [vmem:[%s50_s1 + $0x1] ss:$3 sm:$0xf] %vm7_vm0, %v11_v4  }
  0x80   :  { %v17_v5 = vpop.permute.xlu0 %16  }
  0x81   :  { %22 = vst.msk [vmem:[%s50_s1 + $0x2] ss:$3 sm:$0xf] %vm7_vm0, %v17_v5  }

// kernel: xtorgb_forward.1
= control target key start
LH: loop header
LB: loop body
LE: loop exit
PB: predicated region body
PF: predicated region fallthrough
CT: control target
= control target key end

     0   :  { %v731_v1 = vmov 0   ;;  %vm173_vm0 = vcmask 654336   ;;  %v732_v32 = vmov 0.0   ;;  %vm733_vm1 = vmmov 0   ;;  %s893_s0 = inlined_call_operand.vmem [shape: bf16[80,128], index: 0, kind: input, shape index: {}]   ;;  %s894_s1 = inlined_call_operand.vmem [shape: bf16[256,80], index: 1, kind: input, shape index: {}]   ;;  %s895_s2 = inlined_call_operand.vmem [shape: f32[64,1], index: 2, kind: input, shape index: {}]   ;;  %s896_s4 = inlined_call_operand.vmem [shape: f32[12,1], index: 4, kind: input, shape index: {}]   ;;  %s897_s3 = inlined_call_operand.vmem [shape: bf16[12,64], index: 3, kind: input, shape index: {}]   ;;  %s898_s5 = inlined_call_operand.vmem [shape: bf16[12,128], index: 5, kind: output, shape index: {}]  }
   0x1   :  { %v701_v0 = vld [vmem:[%s893_s0] sm:$0xff]   ;;  %699 = vset.pattern.permute.xlu0 %v731_v1  ;;  %700 = vset.pattern.permute.xlu1 %v731_v1  ;;  %v702_v2 = vld [vmem:[%s893_s0 + $0x8] sm:$0xff]   ;;  %v703_v3 = vld [vmem:[%s893_s0 + $0x10] sm:$0xff]   ;;  %vm494_vm2 = vcmask 523264  }
   0x2   :  { %632 = vmatprep.subr.bf16.mxu0 %v701_v0  ;;  %686 = vmatprep.subr.bf16.mxu1 %v701_v0  ;;  %v706_v4 = vld [vmem:[%s894_s1] sm:$0xff]   ;;  %v704_v5 = vld [vmem:[%s893_s0 + $0x18] sm:$0xff]   ;;  %v710_v6 = vld [vmem:[%s894_s1 + $0x50] sm:$0xff]  }
   0x3   :  { %633 = vmatpush3.bf16.msra.mxu0 %v701_v0  ;;  %691 = vmatpush3.bf16.msra.mxu1 %v701_v0  ;;  %v705_v7 = vld [vmem:[%s893_s0 + $0x20] sm:$0xff]   ;;  %v707_v8 = vld [vmem:[%s894_s1 + $0x8] sm:$0xff]   ;;  %v708_v9 = vld [vmem:[%s894_s1 + $0x10] sm:$0xff]  }
   0x4   :  { %634 = vmatprep.subr.bf16.mxu0 %v702_v2  ;;  %687 = vmatprep.subr.bf16.mxu1 %v702_v2  ;;  %v711_v10 = vld [vmem:[%s894_s1 + $0x58] sm:$0xff]   ;;  %v714_v11 = vld [vmem:[%s894_s1 + $0x60] sm:$0xff]   ;;  %v409_v13 = vld [vmem:[%s895_s2 + $0x10] sm:$0xff] }
   0x5   :  { %642 = vmatprep.mubr.msk.bf16.mxu0 %vm173_vm0, %v706_v4  ;;  %662 = vmatprep.mubr.msk.bf16.mxu1 %vm173_vm0, %v710_v6  ;;  %v407_v12 = vld [vmem:[%s895_s2] sm:$0xff]  ;;  %v408_v14 = vld [vmem:[%s895_s2 + $0x8] sm:$0xff]  ;;  %v410_v15 = vld [vmem:[%s895_s2 + $0x18] sm:$0xff] }
   0x6   :  { %417 = vperm.xlu0 %699, %v407_v12   ;;  %427 = vperm.xlu1 %700, %v409_v13   ;;  %v709_v16 = vld [vmem:[%s894_s1 + $0x18] sm:$0xff]   ;;  %v715_v17 = vld [vmem:[%s894_s1 + $0x68] sm:$0xff]   ;;  %v712_v18 = vld [vmem:[%s894_s1 + $0x20] sm:$0xff]  }
   0x7   :  { %635 = vmatpush3.bf16.msra.mxu0 %v702_v2  ;;  %692 = vmatpush3.bf16.msra.mxu1 %v702_v2  ;;  %v718_v19 = vld [vmem:[%s894_s1 + $0x70] sm:$0xff]   ;;  %v411_v20 = vld [vmem:[%s895_s2 + $0x20] sm:$0xff]  ;;  %v412_v21 = vld [vmem:[%s895_s2 + $0x28] sm:$0xff] }
   0x8   :  { %636 = vmatprep.subr.bf16.mxu0 %v703_v3  ;;  %688 = vmatprep.subr.bf16.mxu1 %v703_v3  ;;  %v413_v22 = vld [vmem:[%s895_s2 + $0x30] sm:$0xff]  ;;  %v414_v23 = vld [vmem:[%s895_s2 + $0x38] sm:$0xff]  ;;  %v713_v24 = vld [vmem:[%s894_s1 + $0x28] sm:$0xff]  }
   0x9   :  { %v719_v25 = vld [vmem:[%s894_s1 + $0x78] sm:$0xff]   ;;  %v716_v26 = vld [vmem:[%s894_s1 + $0x30] sm:$0xff]   ;;  %v477_v27 = vld [vmem:[%s896_s4] sm:$0xff] }
   0xa   :  { %422 = vperm.xlu0 %699, %v408_v14   ;;  %432 = vperm.xlu1 %700, %v410_v15   ;;  %v478_v28 = vld [vmem:[%s896_s4 + $0x8] sm:$0xf]  ;;  %v717_v29 = vld [vmem:[%s894_s1 + $0x38] sm:$0xff]   ;;  %v720_v30 = vld [vmem:[%s894_s1 + $0x40] sm:$0xff]  }
   0xb   :  { %637 = vmatpush3.bf16.msra.mxu0 %v703_v3  ;;  %693 = vmatpush3.bf16.msra.mxu1 %v703_v3  ;;  %v721_v31 = vld [vmem:[%s894_s1 + $0x48] sm:$0xff]  }
   0xc   :  { %638 = vmatprep.subr.bf16.mxu0 %v704_v5  ;;  %689 = vmatprep.subr.bf16.mxu1 %v704_v5 }
   0xe   :  { %437 = vperm.xlu0 %699, %v411_v20   ;;  %442 = vperm.xlu1 %700, %v412_v21  }
   0xf   :  { %639 = vmatpush3.bf16.msra.mxu0 %v704_v5  ;;  %694 = vmatpush3.bf16.msra.mxu1 %v704_v5 }
  0x10   :  { %640 = vmatprep.subr.bf16.mxu0 %v705_v7  ;;  %690 = vmatprep.subr.bf16.mxu1 %v705_v7 }
  0x12   :  { %447 = vperm.xlu0 %699, %v413_v22   ;;  %452 = vperm.xlu1 %700, %v414_v23  }
  0x13   :  { %641 = vmatpush3.bf16.msra.mxu0 %v705_v7  ;;  %695 = vmatpush3.bf16.msra.mxu1 %v705_v7 }
  0x14   :  { %674 = vmatprep.subr.bf16.mxu1 %v732_v32 }
  0x16   :  { %643 = vmatmul.mubr.msk.bf16.vlgmr.msra.gmra.mrb[0].mxu0 %vm173_vm0, %v707_v8  ;;  %663 = vmatmul.mubr.msk.bf16.vlgmr.msra.gmra.mrb[0].mxu1 %vm173_vm0, %v711_v10 }
  0x17   :  { %646 = vmatprep.mubr.msk.bf16.mxu0 %vm173_vm0, %v708_v9  ;;  %666 = vmatprep.mubr.msk.bf16.mxu1 %vm173_vm0, %v714_v11 }
  0x18   :  { %481 = vperm.xlu0 %699, %v477_v27   ;;  %486 = vperm.xlu1 %700, %v478_v28  }
  0x1e   :  { %647 = vmatmul.mubr.msk.bf16.gmra.mrb[4].mxu0 %vm173_vm0, %v709_v16  ;;  %667 = vmatmul.mubr.msk.bf16.gmra.mrb[4].mxu1 %vm173_vm0, %v715_v17 }
  0x1f   :  { %650 = vmatprep.mubr.msk.bf16.mxu0 %vm173_vm0, %v712_v18  ;;  %670 = vmatprep.mubr.msk.bf16.mxu1 %vm173_vm0, %v718_v19 }
  0x26   :  { %651 = vmatmul.mubr.msk.bf16.gmra.mrb[8].mxu0 %vm173_vm0, %v713_v24  ;;  %671 = vmatmul.mubr.msk.bf16.gmra.mrb[8].mxu1 %vm173_vm0, %v719_v25 }
  0x27   :  { %654 = vmatprep.mubr.msk.bf16.mxu0 %vm173_vm0, %v716_v26  ;;  %682 = vmatprep.mubr.msk.bf16.mxu1 %vm733_vm1, %v732_v32 }
  0x2e   :  { %655 = vmatmul.mubr.msk.bf16.gmra.mrb[12].mxu0 %vm173_vm0, %v717_v29 }
  0x2f   :  { %658 = vmatprep.mubr.msk.bf16.mxu0 %vm173_vm0, %v720_v30 }
  0x36   :  { %659 = vmatmul.mubr.msk.bf16.gmra.mrb[16].mxu0 %vm173_vm0, %v721_v31 }
  0x85   :  { %v877_v41 = vpop.permute.xlu0 %417  ;;  %v428_v42 = vpop.permute.xlu1 %427 }
  0x89   :  { %v423_v51 = vpop.permute.xlu0 %422  ;;  %v433_v52 = vpop.permute.xlu1 %432 }
  0x8d   :  { %v438_v1 = vpop.permute.xlu0 %437  ;;  %v443_v3 = vpop.permute.xlu1 %442 }
  0x91   :  { %v448_v13 = vpop.permute.xlu0 %447  ;;  %v453_v18 = vpop.permute.xlu1 %452 }
  0xe9   :  { %v644_v33 = vpop.f32.mrb[0].mxu0  ;;  %v664_v34 = vpop.f32.mrb[0].mxu1 }
  0xea   :  { %v256_v35 = vpop.f32.mrb[1].mxu0  ;;  %v336_v36 = vpop.f32.mrb[1].mxu1 }
  0xeb   :  { %v645_v37 = vpop.f32.mrb[2].mxu0  ;;  %v665_v38 = vpop.f32.mrb[2].mxu1 }
  0xec   :  { %v875_v39 = vpop.f32.mrb[3].mxu0  ;;  %v339_v40 = vpop.f32.mrb[3].mxu1 }
  0xf1   :  { %v648_v43 = vpop.f32.mrb[4].mxu0  ;;  %v668_v44 = vpop.f32.mrb[4].mxu1 }
  0xf2   :  { %v272_v45 = vpop.f32.mrb[5].mxu0  ;;  %v352_v46 = vpop.f32.mrb[5].mxu1 }
  0xf3   :  { %v649_v47 = vpop.f32.mrb[6].mxu0  ;;  %v669_v48 = vpop.f32.mrb[6].mxu1 }
  0xf4   :  { %v275_v49 = vpop.f32.mrb[7].mxu0  ;;  %v355_v50 = vpop.f32.mrb[7].mxu1 }
  0xf9   :  { %v652_v53 = vpop.f32.mrb[8].mxu0  ;;  %v672_v54 = vpop.f32.mrb[8].mxu1 }
  0xfa   :  { %v385_v55 = vmax.f32 %v644_v33, %v652_v53  ;;  %v288_v56 = vpop.f32.mrb[9].mxu0  ;;  %v368_v57 = vpop.f32.mrb[9].mxu1 }
  0xfb   :  { %v383_v58 = vmax.f32 %v256_v35, %v288_v56  ;;  %v653_v59 = vpop.f32.mrb[10].mxu0  ;;  %v673_v60 = vpop.f32.mrb[10].mxu1 }
  0xfc   :  { %v386_v61 = vmax.f32 %v645_v37, %v653_v59  ;;  %v291_v62 = vpop.f32.mrb[11].mxu0  ;;  %v371_v63 = vpop.f32.mrb[11].mxu1 }
  0xfd   :  { %v384_v0 = vmax.f32 %v875_v39, %v291_v62 }
 0x101   :  { %v656_v2 = vpop.f32.mrb[12].mxu0 }
 0x102   :  { %v389_v4 = vmax.f32 %v648_v43, %v656_v2  ;;  %v304_v5 = vpop.f32.mrb[13].mxu0 }
 0x103   :  { %v387_v6 = vmax.f32 %v272_v45, %v304_v5  ;;  %v657_v7 = vpop.f32.mrb[14].mxu0 }
 0x104   :  { %v390_v8 = vmax.f32 %v649_v47, %v657_v7  ;;  %v307_v9 = vpop.f32.mrb[15].mxu0  ;;  %v397_v10 = vmax.f32 %v389_v4, %v664_v34 }
 0x105   :  { %v388_v11 = vmax.f32 %v275_v49, %v307_v9  ;;  %v395_v12 = vmax.f32 %v387_v6, %v336_v36 }
 0x106   :  { %v405_v14 = vmax.f32 %v397_v10, %v672_v54  ;;  %v398_v15 = vmax.f32 %v390_v8, %v665_v38 }
 0x107   :  { %v403_v16 = vmax.f32 %v395_v12, %v368_v57  ;;  %v396_v17 = vmax.f32 %v388_v11, %v339_v40 }
 0x108   :  { %v461_v19 = vadd.f32 %v448_v13, %v405_v14  ;;  %v406_v20 = vmax.f32 %v398_v15, %v673_v60 }
 0x109   :  { %v459_v21 = vadd.f32 %v438_v1, %v403_v16  ;;  %v404_v22 = vmax.f32 %v396_v17, %v371_v63  ;;  %v660_v23 = vpop.f32.mrb[16].mxu0 }
 0x10a   :  { %v462_v24 = vadd.f32 %v453_v18, %v406_v20  ;;  %v393_v25 = vmax.f32 %v385_v55, %v660_v23  ;;  %v320_v26 = vpop.f32.mrb[17].mxu0  ;;  %v469_v30 = vmax.f32 %v461_v19, 0.0 }
 0x10b   :  { %v460_v27 = vadd.f32 %v443_v3, %v404_v22  ;;  %v391_v28 = vmax.f32 %v383_v58, %v320_v26  ;;  %v661_v29 = vpop.f32.mrb[18].mxu0  ;;  %v467_v36 = vmax.f32 %v459_v21, 0.0 }
 0x10c   :  { %v470_v31 = vmax.f32 %v462_v24, 0.0  ;;  %v401_v33 = vmax.f32 %v393_v25, %v668_v44  ;;  %v394_v34 = vmax.f32 %v386_v61, %v661_v29  ;;  %v323_v35 = vpop.f32.mrb[19].mxu0 }
 0x10d   :  { %v468_v37 = vmax.f32 %v460_v27, 0.0  ;;  %v399_v38 = vmax.f32 %v391_v28, %v352_v46  ;;  %v392_v39 = vmax.f32 %v384_v0, %v323_v35 }
 0x10e   :  { %v476_v40 = vpack.c.bf16 %v470_v31, %v469_v30  ;;  %v457_v43 = vadd.f32 %v428_v42, %v401_v33  ;;  %v402_v45 = vmax.f32 %v394_v34, %v669_v48  ;;  %v482_v42 = vpop.permute.xlu0 %481 }
 0x10f   :  { %v475_v47 = vpack.c.bf16 %v468_v37, %v467_v36  ;;  %v455_v49 = vadd.f32 %v877_v41, %v399_v38  ;;  %v400_v53 = vmax.f32 %v392_v39, %v355_v50  ;;  %v722_v41 = vld [vmem:[%s897_s3] sm:$0x3f]  }
 0x110   :  { %v458_v54 = vadd.f32 %v433_v52, %v402_v45  ;;  %v465_v56 = vmax.f32 %v457_v43, 0.0 }
 0x111   :  { %v456_v55 = vadd.f32 %v423_v51, %v400_v53  ;;  %v463_v58 = vmax.f32 %v455_v49, 0.0  ;;  %v487_v51 = vpop.permute.xlu1 %486 }
 0x112   :  { %v466_v57 = vmax.f32 %v458_v54, 0.0 }
 0x113   :  { %v464_v59 = vmax.f32 %v456_v55, 0.0 }
 0x114   :  { %v474_v44 = vpack.c.bf16 %v466_v57, %v465_v56 }
 0x115   :  { %v473_v60 = vpack.c.bf16 %v464_v59, %v463_v58 }
 0x117   :  { %675 = vmatpush3.bf16.msra.mxu1 %v473_v60 }
 0x118   :  { %676 = vmatprep.subr.bf16.mxu1 %v732_v32 }
 0x11b   :  { %677 = vmatpush3.bf16.msra.mxu1 %v474_v44 }
 0x11c   :  { %678 = vmatprep.subr.bf16.mxu1 %v732_v32 }
 0x11f   :  { %679 = vmatpush3.bf16.msra.mxu1 %v475_v47 }
 0x120   :  { %680 = vmatprep.subr.bf16.mxu1 %v732_v32 }
 0x123   :  { %681 = vmatpush3.bf16.msra.mxu1 %v476_v40 }
 0x126   :  { %683 = vmatmul.mubr.msk.bf16.vlgmr.msra.gmra.mrb[12].mxu1 %vm494_vm2, %v722_v41 }
 0x1f9   :  { %v532_v46 = vpop.f32.mrb[12].mxu1 }
 0x1fa   :  { %v533_v48 = vadd.f32 %v532_v46, %v482_v42  ;;  %v684_v50 = vpop.f32.mrb[13].mxu1 }
 0x1fb   :  { %v535_v52 = vpop.f32.mrb[14].mxu1 }
 0x1fc   :  { %v539_v61 = vsub.f32 0.0, %v533_v48  ;;  %v536_v62 = vadd.f32 %v535_v52, %v487_v51  ;;  %v685_v63 = vpop.f32.mrb[15].mxu1 }
 0x1fe   :  { %v541_v0 = vmul.f32 1.442695, %v539_v61  ;;  %v540_v1 = vsub.f32 0.0, %v536_v62 }
 0x200   :  { %723 = vpow2.f32 %v541_v0  ;;  %v543_v32 = vmul.f32 1.442695, %v540_v1 }
 0x202   :  { %725 = vpow2.f32 %v543_v32 }
 0x20a   :  { %v724_v2 = vpop.eup %723 }
 0x20b   :  { %v545_v3 = vadd.f32 1.0, %v724_v2 }
 0x20c   :  { %v726_v4 = vpop.eup %725 }
 0x20d   :  { %727 = vrcp.f32 %v545_v3  ;;  %v546_v5 = vadd.f32 1.0, %v726_v4 }
 0x20f   :  { %729 = vrcp.f32 %v546_v5 }
 0x217   :  { %v728_v6 = vpop.eup %727 }
 0x218   :  { %v604_v7 = vpack.c.bf16 %v728_v6, %v728_v6 }
 0x219   :  { %v730_v8 = vpop.eup %729 }
 0x21a   :  { %557 = vst [vmem:[%s898_s5] sm:$0xf] %v604_v7  ;;  %v605_v9 = vpack.c.bf16 %v730_v8, %v730_v8 }
 0x21c   :  { %558 = vst [vmem:[%s898_s5 + $0x4] sm:$0x3] %v605_v9 }

</bundles_post_ra>
